<compile_context>
chip_gen: v6e
topology: v6e:2x2x1
jax: 0.10.0
libtpu: 0.0.40
codegen_flags: <defaults>
</compile_context>

<pallas_src>
import functools

import jax
import jax.numpy as jnp
from jax.experimental import pallas as pl
from jax.experimental.pallas import tpu as pltpu


def _kto_kernel(beta, desirable_weight, undesirable_weight, world_size,
                n_chosen, n_rejected, n_kl,
                chosen_ref, rejected_ref, kl_ref,
                rewards_ref, scalars_ref):
    f32 = jnp.float32

    # ---- KL term: mean(policy_KL - reference_KL), clamped at 0 ----
    kl_pair = kl_ref[...].astype(f32)                         # (2, n_kl)
    kl = jnp.sum(kl_pair[0:1, :] - kl_pair[1:2, :]) / f32(n_kl)
    # TODO(synk): dist.all_reduce(SUM) across devices has no in-kernel equivalent
    # here; on a single device with world_size=1 it is the identity.
    kl = jnp.maximum(kl / f32(world_size), f32(0.0))

    # ---- chosen branch ----
    c = chosen_ref[...].astype(f32)                           # (2, n_chosen)
    chosen_logratios = c[0:1, :] - c[1:2, :]
    # 1 - sigmoid(z) == sigmoid(-z): saves a VPU subtract + broadcast of 1.0.
    chosen_losses = jax.nn.sigmoid(beta * (kl - chosen_logratios))
    chosen_rewards = beta * chosen_logratios

    # ---- rejected branch ----
    r = rejected_ref[...].astype(f32)                         # (2, n_rejected)
    rejected_logratios = r[0:1, :] - r[1:2, :]
    rejected_losses = jax.nn.sigmoid(beta * (rejected_logratios - kl))
    rejected_rewards = beta * rejected_logratios

    # ---- losses = mean(cat(dw * chosen_losses, uw * rejected_losses)) ----
    total = (desirable_weight * jnp.sum(chosen_losses)
             + undesirable_weight * jnp.sum(rejected_losses))
    loss = total / f32(n_chosen + n_rejected)

    # Single packed rewards output: [chosen | rejected] along the lane axis.
    rewards_ref[:, 0:n_chosen] = chosen_rewards.astype(rewards_ref.dtype)
    rewards_ref[:, n_chosen:n_chosen + n_rejected] = rejected_rewards.astype(
        rewards_ref.dtype)

    # Scalar outputs go to SMEM (skips the padded VMEM tile + its writeback DMA).
    scalars_ref[0] = loss
    scalars_ref[1] = kl


def kto_loss(policy_chosen_logps, policy_rejected_logps, policy_KL_logps,
             reference_chosen_logps, reference_rejected_logps, reference_KL_logps,
             *, beta=0.1, desirable_weight=1.0, undesirable_weight=1.0,
             world_size=1):
    """Pallas-backed KTO loss. Returns (losses, chosen_rewards, rejected_rewards, KL)."""
    n_chosen = policy_chosen_logps.shape[0]
    n_rejected = policy_rejected_logps.shape[0]
    n_kl = policy_KL_logps.shape[0]
    # TODO(synk): the PyTorch empty-batch (shape[0]==0) branches are not handled;
    # this kernel assumes n_chosen > 0, n_rejected > 0 and n_kl > 0.
    assert n_chosen > 0 and n_rejected > 0 and n_kl > 0

    # Stack each policy/reference pair -> 3 input DMAs instead of 6. Keep the
    # original dtype (e.g. bf16); the kernel casts to f32 after the load.
    chosen = jnp.stack([policy_chosen_logps, reference_chosen_logps], axis=0)
    rejected = jnp.stack([policy_rejected_logps, reference_rejected_logps], axis=0)
    kl_pair = jnp.stack([policy_KL_logps, reference_KL_logps], axis=0)

    kernel = functools.partial(
        _kto_kernel, float(beta), float(desirable_weight),
        float(undesirable_weight), int(world_size),
        n_chosen, n_rejected, n_kl)

    f32 = jnp.float32
    vmem_spec = pl.BlockSpec(memory_space=pltpu.VMEM)   # full array resident in VMEM
    smem_spec = pl.BlockSpec(memory_space=pltpu.SMEM)   # scalar outputs in SMEM

    out_shapes = (
        jax.ShapeDtypeStruct((1, n_chosen + n_rejected), f32),  # packed rewards
        jax.ShapeDtypeStruct((2,), f32),                        # [loss, KL]
    )

    rewards, scalars = pl.pallas_call(
        kernel,
        out_shape=out_shapes,
        in_specs=[vmem_spec, vmem_spec, vmem_spec],
        out_specs=(vmem_spec, smem_spec),
    )(chosen, rejected, kl_pair)

    return (scalars[0],
            rewards[0, :n_chosen],
            rewards[0, n_chosen:],
            scalars[1])


def _kto_loss_ref(pc, pr, pk, rc, rr, rk, *, beta, dw, uw, world_size):
    """Pure-JAX reference for verification."""
    kl = jnp.maximum(jnp.mean(pk.astype(jnp.float32) - rk.astype(jnp.float32))
                     / world_size, 0.0)
    chosen_logratios = pc.astype(jnp.float32) - rc.astype(jnp.float32)
    chosen_losses = 1.0 - jax.nn.sigmoid(beta * (chosen_logratios - kl))
    chosen_rewards = beta * chosen_logratios
    rejected_logratios = pr.astype(jnp.float32) - rr.astype(jnp.float32)
    rejected_losses = 1.0 - jax.nn.sigmoid(beta * (kl - rejected_logratios))
    rejected_rewards = beta * rejected_logratios
    losses = jnp.mean(jnp.concatenate([dw * chosen_losses, uw * rejected_losses]))
    return losses, chosen_rewards, rejected_rewards, kl


if __name__ == "__main__":
    key = jax.random.PRNGKey(0)
    # Uneven sampling: chosen / rejected / KL batches differ in size.
    n_chosen, n_rejected, n_kl = 6, 10, 8
    ks = jax.random.split(key, 6)
    # Log-probs are negative numbers; scale for realism.
    policy_chosen = -jnp.abs(jax.random.normal(ks[0], (n_chosen,), jnp.float32)) * 5.0
    policy_rejected = -jnp.abs(jax.random.normal(ks[1], (n_rejected,), jnp.float32)) * 5.0
    policy_kl = -jnp.abs(jax.random.normal(ks[2], (n_kl,), jnp.float32)) * 5.0
    ref_chosen = -jnp.abs(jax.random.normal(ks[3], (n_chosen,), jnp.float32)) * 5.0
    ref_rejected = -jnp.abs(jax.random.normal(ks[4], (n_rejected,), jnp.float32)) * 5.0
    ref_kl = -jnp.abs(jax.random.normal(ks[5], (n_kl,), jnp.float32)) * 5.0

    beta, dw, uw, world_size = 0.1, 1.0, 1.0, 1

    out = kto_loss(policy_chosen, policy_rejected, policy_kl,
                   ref_chosen, ref_rejected, ref_kl,
                   beta=beta, desirable_weight=dw, undesirable_weight=uw,
                   world_size=world_size)
    out = jax.block_until_ready(out)

    ref = _kto_loss_ref(policy_chosen, policy_rejected, policy_kl,
                        ref_chosen, ref_rejected, ref_kl,
                        beta=beta, dw=dw, uw=uw, world_size=world_size)
    for got, want in zip(out, ref):
        assert jnp.allclose(got, want, atol=1e-5, rtol=1e-5), (got, want)

    print("KERNEL_OK")
</pallas_src>

<mosaic_0001>
module attributes {stable_mosaic.version = 11 : i64} {
  func.func @_kto_kernel(%arg0: memref<2x6xf32, #tpu.memory_space<vmem>>, %arg1: memref<2x10xf32, #tpu.memory_space<vmem>>, %arg2: memref<2x8xf32, #tpu.memory_space<vmem>>, %arg3: memref<1x16xf32, #tpu.memory_space<vmem>>, %arg4: memref<2xf32, #tpu.memory_space<smem>>) attributes {dimension_semantics = [], scalar_prefetch = 0 : i64, scratch_operands = 0 : i64, tpu.core_type = #tpu.core_type<tc>} {
    %c0 = arith.constant 0 : index
    %c0_0 = arith.constant 0 : index
    %0 = vector.load %arg2[%c0, %c0_0] : memref<2x8xf32, #tpu.memory_space<vmem>>, vector<2x8xf32>
    %1 = vector.extract_strided_slice %0 {offsets = [0, 0], sizes = [1, 8], strides = [1, 1]} : vector<2x8xf32> to vector<1x8xf32>
    %2 = vector.extract_strided_slice %0 {offsets = [1, 0], sizes = [1, 8], strides = [1, 1]} : vector<2x8xf32> to vector<1x8xf32>
    %3 = arith.subf %1, %2 : vector<1x8xf32>
    %4 = vector.shape_cast %3 : vector<1x8xf32> to vector<1x1x8xf32>
    %cst = arith.constant dense<0.000000e+00> : vector<1xf32>
    %5 = vector.multi_reduction <add>, %4, %cst [1, 2] : vector<1x1x8xf32> to vector<1xf32>
    %6 = vector.shape_cast %5 : vector<1xf32> to vector<1x1x1xf32>
    %7 = vector.extract %6[0, 0, 0] : f32 from vector<1x1x1xf32>
    %cst_1 = arith.constant 8.000000e+00 : f32
    %8 = arith.divf %7, %cst_1 : f32
    %cst_2 = arith.constant 1.000000e+00 : f32
    %9 = arith.divf %8, %cst_2 : f32
    %cst_3 = arith.constant 0.000000e+00 : f32
    %10 = arith.maximumf %9, %cst_3 : f32
    %c0_4 = arith.constant 0 : index
    %c0_5 = arith.constant 0 : index
    %11 = vector.load %arg0[%c0_4, %c0_5] : memref<2x6xf32, #tpu.memory_space<vmem>>, vector<2x6xf32>
    %12 = vector.extract_strided_slice %11 {offsets = [0, 0], sizes = [1, 6], strides = [1, 1]} : vector<2x6xf32> to vector<1x6xf32>
    %13 = vector.extract_strided_slice %11 {offsets = [1, 0], sizes = [1, 6], strides = [1, 1]} : vector<2x6xf32> to vector<1x6xf32>
    %14 = arith.subf %12, %13 : vector<1x6xf32>
    %15 = vector.broadcast %10 : f32 to vector<1x6xf32>
    %16 = arith.subf %15, %14 : vector<1x6xf32>
    %cst_6 = arith.constant 1.000000e-01 : f32
    %17 = vector.broadcast %cst_6 : f32 to vector<1x6xf32>
    %18 = arith.mulf %17, %16 : vector<1x6xf32>
    %19 = arith.negf %18 : vector<1x6xf32>
    %20 = math.exp %19 : vector<1x6xf32>
    %cst_7 = arith.constant 1.000000e+00 : f32
    %21 = vector.broadcast %cst_7 : f32 to vector<1x6xf32>
    %22 = arith.addf %21, %20 : vector<1x6xf32>
    %23 = arith.divf %21, %22 : vector<1x6xf32>
    %cst_8 = arith.constant 1.000000e-01 : f32
    %24 = vector.broadcast %cst_8 : f32 to vector<1x6xf32>
    %25 = arith.mulf %24, %14 : vector<1x6xf32>
    %c0_9 = arith.constant 0 : index
    %c0_10 = arith.constant 0 : index
    %26 = vector.load %arg1[%c0_9, %c0_10] : memref<2x10xf32, #tpu.memory_space<vmem>>, vector<2x10xf32>
    %27 = vector.extract_strided_slice %26 {offsets = [0, 0], sizes = [1, 10], strides = [1, 1]} : vector<2x10xf32> to vector<1x10xf32>
    %28 = vector.extract_strided_slice %26 {offsets = [1, 0], sizes = [1, 10], strides = [1, 1]} : vector<2x10xf32> to vector<1x10xf32>
    %29 = arith.subf %27, %28 : vector<1x10xf32>
    %30 = vector.broadcast %10 : f32 to vector<1x10xf32>
    %31 = arith.subf %29, %30 : vector<1x10xf32>
    %cst_11 = arith.constant 1.000000e-01 : f32
    %32 = vector.broadcast %cst_11 : f32 to vector<1x10xf32>
    %33 = arith.mulf %32, %31 : vector<1x10xf32>
    %34 = arith.negf %33 : vector<1x10xf32>
    %35 = math.exp %34 : vector<1x10xf32>
    %cst_12 = arith.constant 1.000000e+00 : f32
    %36 = vector.broadcast %cst_12 : f32 to vector<1x10xf32>
    %37 = arith.addf %36, %35 : vector<1x10xf32>
    %38 = arith.divf %36, %37 : vector<1x10xf32>
    %cst_13 = arith.constant 1.000000e-01 : f32
    %39 = vector.broadcast %cst_13 : f32 to vector<1x10xf32>
    %40 = arith.mulf %39, %29 : vector<1x10xf32>
    %41 = vector.shape_cast %23 : vector<1x6xf32> to vector<1x1x6xf32>
    %cst_14 = arith.constant dense<0.000000e+00> : vector<1xf32>
    %42 = vector.multi_reduction <add>, %41, %cst_14 [1, 2] : vector<1x1x6xf32> to vector<1xf32>
    %43 = vector.shape_cast %42 : vector<1xf32> to vector<1x1x1xf32>
    %44 = vector.extract %43[0, 0, 0] : f32 from vector<1x1x1xf32>
    %cst_15 = arith.constant 1.000000e+00 : f32
    %45 = arith.mulf %cst_15, %44 : f32
    %46 = vector.shape_cast %38 : vector<1x10xf32> to vector<1x1x10xf32>
    %cst_16 = arith.constant dense<0.000000e+00> : vector<1xf32>
    %47 = vector.multi_reduction <add>, %46, %cst_16 [1, 2] : vector<1x1x10xf32> to vector<1xf32>
    %48 = vector.shape_cast %47 : vector<1xf32> to vector<1x1x1xf32>
    %49 = vector.extract %48[0, 0, 0] : f32 from vector<1x1x1xf32>
    %cst_17 = arith.constant 1.000000e+00 : f32
    %50 = arith.mulf %cst_17, %49 : f32
    %51 = arith.addf %45, %50 : f32
    %cst_18 = arith.constant 1.600000e+01 : f32
    %52 = arith.divf %51, %cst_18 : f32
    %c0_19 = arith.constant 0 : index
    %c0_20 = arith.constant 0 : index
    %53 = vector.load %arg3[%c0_19, %c0_20] : memref<1x16xf32, #tpu.memory_space<vmem>>, vector<1x6xf32>
    tpu.vector_store %arg3[%c0_19, %c0_20], %25 {strides = array<i32>} : memref<1x16xf32, #tpu.memory_space<vmem>>, vector<1x6xf32>,
    %c0_21 = arith.constant 0 : index
    %c6 = arith.constant 6 : index
    %54 = vector.load %arg3[%c0_21, %c6] : memref<1x16xf32, #tpu.memory_space<vmem>>, vector<1x10xf32>
    tpu.vector_store %arg3[%c0_21, %c6], %40 {strides = array<i32>} : memref<1x16xf32, #tpu.memory_space<vmem>>, vector<1x10xf32>,
    %c0_22 = arith.constant 0 : index
    %55 = memref.load %arg4[%c0_22] : memref<2xf32, #tpu.memory_space<smem>>
    memref.store %52, %arg4[%c0_22] : memref<2xf32, #tpu.memory_space<smem>>
    %c1 = arith.constant 1 : index
    %56 = memref.load %arg4[%c1] : memref<2xf32, #tpu.memory_space<smem>>
    memref.store %10, %arg4[%c1] : memref<2xf32, #tpu.memory_space<smem>>
    return
  }
}

</mosaic_0001>

<bundles_post_ra>
// kernel: tpu_custom_call.1
= control target key start
LH: loop header
LB: loop body
LE: loop exit
PB: predicated region body
PF: predicated region fallthrough
CT: control target
= control target key end

     0   :  { %10 = vsyncpa [#allocation3], 0  ;;  %s303_s0 = inlined_call_operand.hbm [shape: f32[2,6], index: 0, kind: input, shape index: {}]   ;;  %s304_s1 = inlined_call_operand.hbm [shape: f32[2,10], index: 1, kind: input, shape index: {}]   ;;  %s305_s2 = inlined_call_operand.vmem [shape: f32[2,8], index: 2, kind: input, shape index: {}]   ;;  %s306_s3 = inlined_call_operand.hbm [shape: f32[1,16], index: 3, kind: output, shape index: {0}]   ;;  %s307_s4 = inlined_call_operand.hbm [shape: f32[2], index: 4, kind: output, shape index: {1}]  }
   0x1   :  { %11 = vsyncpa [#allocation7], 0 }
   0x2   :  { %12 = vsyncpa [#allocation4], 0 }
   0x3   :  { %13 = vsyncpa [#allocation5], 0  ;;  %s255_s15 = smov [#allocation2]   ;;  %s256_s17 = smov [#allocation6]  }
   0x4   :  { %s20_s16 = sshll.u32 %s255_s15, 4  ;;  %s30_s18 = sshll.u32 %s256_s17, 4  ;;  %s21_s16 = int_to_ptr.vmem [resolvable:$true] %s20_s16  ;;  %s31_s18 = int_to_ptr.vmem [resolvable:$true] %s30_s18 }
   0x5   :  { %s187_s19 = scalar_lea.vmem %s21_s16, 32  ;;  %p192_p1 = scmp.lt.s32.totalorder %s21_s16, %s21_s16 }
   0x6   :  { %p188_p0 = scmp.ne.s32.totalorder %s21_s16, %s187_s19  ;;  %p193_p2 = scmp.lt.s32.totalorder %s187_s19, %s187_s19 }
   0x8   :  { %p194_p3 = por %p193_p2, %p192_p1 }
   0xa   :  { %p195_p4 = pnand %p194_p3, %p188_p0 }
   0xc   :  { %198 = shalt.err (!%p195_p4)
}
   0xd   :  { %23 = dma.hbm_to_vmem [thread:$0]  %s303_s0, 32, %s21_s16, [#allocation3]  }
   0xe   :  { %s207_s22 = scalar_lea.vmem %s31_s18, 32  ;;  %p212_p6 = scmp.lt.s32.totalorder %s31_s18, %s31_s18 }
   0xf   :  { %p208_p5 = scmp.ne.s32.totalorder %s31_s18, %s207_s22  ;;  %p213_p7 = scmp.lt.s32.totalorder %s207_s22, %s207_s22 }
  0x11   :  { %p214_p8 = por %p213_p7, %p212_p6 }
  0x13   :  { %p215_p9 = pnand %p214_p8, %p208_p5 }
  0x15   :  { %218 = shalt.err (!%p215_p9)
}
  0x16   :  { %33 = dma.hbm_to_vmem [thread:$0]  %s304_s1, 32, %s31_s18, [#allocation7]  }
  0x17   :  { %247 = dma.done.wait [#allocation3], 32  }
  0x18   :  { %248 = vsyncadd [#allocation3], 4294967264 }
  0x19   :  { %249 = dma.done.wait [#allocation7], 32  }
  0x1a   :  { %250 = vsyncadd [#allocation7], 4294967264  ;;  %v42_v0 = vld [vmem:[%s305_s2] sm:$0x3]  ;;  %vm47_vm0 = vcmask 57344   ;;  %vm91_vm1 = vcmask 40960  }
  0x1b   :  { %v44_v1 = vrot.slane %v42_v0, 1  ;;  %v62_v4 = vld [vmem:[#allocation2] sm:$0x3]  ;;  %v77_v15 = vld [vmem:[#allocation6] sm:$0x3]  ;;  %s257_s2 = smov 0.0  }
  0x1c   :  { %v64_v5 = vrot.slane %v62_v4, 1  ;;  %v79_v16 = vrot.slane %v77_v15, 1  ;;  %vm102_vm2 = vcmask 73728   ;;  %s258_s28 = smov 6   ;;  %s259_s29 = smov [#allocation8]   ;;  %vm122_vm3 = vcmask 122928  }
  0x1d   :  { %v46_v2 = vsub.f32 %v42_v0, %v44_v1  ;;  %s134_s30 = sshll.u32 %s259_s29, 4  ;;  %s135_s30 = int_to_ptr.vmem [resolvable:$true] %s134_s30 }
  0x1e   :  { %v66_v6 = vsub.f32 %v62_v4, %v64_v5  ;;  %v81_v17 = vsub.f32 %v77_v15, %v79_v16  ;;  %s219_s5 = scalar_lea.vmem %s135_s30, 16  ;;  %s223_s6 = scalar_lea.vmem %s135_s30, 32 }
  0x1f   :  { %v48_v3 = vsel %vm47_vm0, %v46_v2, 0.0  ;;  %p220_p10 = scmp.ne.s32.totalorder %s135_s30, %s219_s5  ;;  %p224_p11 = scmp.lt.s32.totalorder %s135_s30, %s135_s30 }
  0x20   :  { %49 = vadd.xlane.f32.xlu0 %v48_v3  ;;  %v76_v7 = vmul.f32 0.1, %v66_v6  ;;  %v90_v33 = vmul.f32 0.1, %v81_v17  ;;  %p225_p12 = scmp.lt.s32.totalorder %s223_s6, %s219_s5 }
  0x22   :  { %117 = vst.msk [vmem:[#allocation8] sm:$0x1] %vm91_vm1, %v76_v7  ;;  %p226_p13 = por %p225_p12, %p224_p11 }
  0x24   :  { %p227_p0 = pnand %p226_p13, %p220_p10 }
  0xa9   :  { %v50_v8 = vpop.xlane.xlu0 %49 }
  0xaa   :  { %v51_v9 = vrot.slane %v50_v8, 4 }
  0xac   :  { %v52_v10 = vadd.f32 %v51_v9, %v50_v8 }
  0xae   :  { %v53_v11 = vrot.slane %v52_v10, 2 }
  0xb0   :  { %v54_v12 = vadd.f32 %v53_v11, %v52_v10 }
  0xb2   :  { %v55_v13 = vrot.slane %v54_v12, 1 }
  0xb4   :  { %v56_v14 = vadd.f32 %v55_v13, %v54_v12 }
  0xb6   :  { %159 = vpush %v56_v14 }
  0xe7   :  { %s160_s0 = spop %159 }
  0xe8   :  { %s60_s1 = smul.f32 0.125, %s160_s0 }
  0xea   :  { %s61_s27 = smax.f32 %s257_s2, %s60_s1 }
  0xeb   :  { %v67_v18 = vstv %s61_s27  ;;  %127 = sst [smem:[#allocation9 + $0x1]] %s61_s27 }
  0xec   :  { %v68_v19 = vsub.f32 %v67_v18, %v66_v6  ;;  %v82_v20 = vsub.f32 %v81_v17, %v67_v18 }
  0xee   :  { %v157_v21 = vmul.f32 -0.1, %v68_v19  ;;  %v158_v22 = vmul.f32 -0.1, %v82_v20 }
  0xf0   :  { %v71_v23 = vmul.f32 1.442695, %v157_v21  ;;  %v85_v24 = vmul.f32 1.442695, %v158_v22 }
  0xf2   :  { %171 = vpow2.f32 %v71_v23 }
  0xf3   :  { %173 = vpow2.f32 %v85_v24 }
  0xff   :  { %v172_v25 = vpop.eup %171 }
 0x100   :  { %v174_v26 = vpop.eup %173  ;;  %v73_v27 = vadd.f32 1.0, %v172_v25 }
 0x101   :  { %v87_v28 = vadd.f32 1.0, %v174_v26 }
 0x102   :  { %175 = vrcp.f32 %v73_v27 }
 0x103   :  { %177 = vrcp.f32 %v87_v28 }
 0x10f   :  { %v176_v29 = vpop.eup %175 }
 0x110   :  { %v178_v30 = vpop.eup %177  ;;  %v92_v31 = vsel %vm91_vm1, %v176_v29, 0.0 }
 0x111   :  { %v103_v32 = vsel %vm102_vm2, %v178_v30, 0.0  ;;  %93 = vadd.xlane.f32.xlu0 %v92_v31 }
 0x112   :  { %104 = vadd.xlane.f32.xlu1 %v103_v32 }
 0x123   :  { %119 = vrot.lane.b32.xlu1 %v90_v33, %s258_s28 }
 0x19a   :  { %v94_v34 = vpop.xlane.xlu0 %93 }
 0x19b   :  { %v105_v35 = vpop.xlane.xlu1 %104  ;;  %v95_v36 = vrot.slane %v94_v34, 4 }
 0x19c   :  { %v106_v37 = vrot.slane %v105_v35, 4 }
 0x19d   :  { %v96_v38 = vadd.f32 %v95_v36, %v94_v34 }
 0x19e   :  { %v107_v39 = vadd.f32 %v106_v37, %v105_v35 }
 0x19f   :  { %v97_v40 = vrot.slane %v96_v38, 2  ;;  %v120_v41 = vpop.permute.xlu1 %119 }
 0x1a0   :  { %v108_v42 = vrot.slane %v107_v39, 2  ;;  %123 = vst.msk [vmem:[#allocation8] sm:$0x1] %vm122_vm3, %v120_v41 }
 0x1a1   :  { %v98_v43 = vadd.f32 %v97_v40, %v96_v38 }
 0x1a2   :  { %230 = shalt.err (!%p227_p0)
}
 0x1a3   :  { %137 = dma.vmem_to_hbm [thread:$0]  %s135_s30, 16, %s306_s3, [#allocation4]   ;;  %v109_v44 = vadd.f32 %v108_v42, %v107_v39  ;;  %v99_v45 = vrot.slane %v98_v43, 1 }
 0x1a4   :  { %s260_s13 = smov [#allocation9]  }
 0x1a5   :  { %v110_v46 = vrot.slane %v109_v44, 1  ;;  %v100_v47 = vadd.f32 %v99_v45, %v98_v43 }
 0x1a7   :  { %v111_v48 = vadd.f32 %v110_v46, %v109_v44  ;;  %161 = vpush %v100_v47 }
 0x1a9   :  { %163 = vpush %v111_v48 }
 0x1d8   :  { %s162_s9 = spop %161 }
 0x1da   :  { %s164_s10 = spop %163 }
 0x1db   :  { %s113_s11 = sadd.f32 %s164_s10, %s162_s9 }
 0x1dd   :  { %s116_s12 = smul.f32 0.0625, %s113_s11 }
 0x1df   :  { %125 = sst [smem:[#allocation9]] %s116_s12 }
 0x1e0   :  { %145 = dma.smem_to_hbm %s260_s13, 16, %s307_s4, [#allocation5]  }
 0x1e1   :  { %251 = dma.done.wait [#allocation4], 16  }
 0x1e2   :  { %252 = vsyncadd [#allocation4], 4294967280 }
 0x1e3   :  { %253 = dma.done.wait [#allocation5], 16  }
 0x1e4   :  { %254 = vsyncadd [#allocation5], 4294967280 }
 0x1e5   :  { %152 = sfence }
 0x1e6   :  { %153 = vsyncpa [#allocation3], 1 }
 0x1e7   :  { %154 = vsyncpa [#allocation7], 1 }
 0x1e8   :  { %155 = vsyncpa [#allocation4], 1 }
 0x1e9   :  { %156 = vsyncpa [#allocation5], 1 }

</bundles_post_ra>
